<compile_context>
chip_gen: v5e
topology: v5e:2x2
jax: 0.10.0
libtpu: 0.0.40
codegen_flags: <defaults>
</compile_context>

<pallas_src>
import math

import jax
import jax.numpy as jnp
from jax import lax
from jax.experimental import pallas as pl
from jax.experimental.pallas import tpu as pltpu


# ----------------------------------------------------------------------------
# In-kernel math helpers
# ----------------------------------------------------------------------------
def _erf_poly(x):
    """erf(x) via Abramowitz & Stegun 7.1.26 (max abs err ~1.5e-7).

    Uses only VPU ops + one EUP exp, which are guaranteed to lower in Mosaic.
    TODO(synk): replace with a native erf lowering if/when Mosaic exposes one.
    """
    a1, a2, a3, a4, a5 = (0.254829592, -0.284496736, 1.421413741,
                          -1.453152027, 1.061405429)
    p = 0.3275911
    sgn = jnp.where(x < 0.0, -1.0, 1.0)
    ax = jnp.abs(x)
    t = 1.0 / (1.0 + p * ax)
    poly = ((((a5 * t + a4) * t + a3) * t + a2) * t + a1) * t
    return sgn * (1.0 - poly * jnp.exp(-ax * ax))


def _gelu(x):
    # Exact (erf-based) GELU, matching torch.nn.GELU() default.
    return 0.5 * x * (1.0 + _erf_poly(x * 0.7071067811865476))


def _linear_nt(h, w_ref, b_ref):
    """y = h @ W^T + b without materializing a transpose.

    h: [tb, in_pad] (f32), w_ref: [out_pad, in_pad], b_ref: [1, out_pad].
    Contraction over the shared in_features axis (lhs dim 1, rhs dim 1).
    """
    y = lax.dot_general(h, w_ref[...],
                        dimension_numbers=(((1,), (1,)), ((), ())),
                        preferred_element_type=jnp.float32)
    return y + b_ref[...]


# ----------------------------------------------------------------------------
# Fused DuelingDQN kernel
# ----------------------------------------------------------------------------
def _make_dueling_kernel(num_shared_layers, inv_num_actions):
    """Kernel over one batch tile.

    ref order: x, (w,b) * num_shared, wv1,bv1, wv2,bv2, wa1,ba1, wa2,ba2, q_out
    All padded columns/rows of the weights and biases are zero, gelu(0)=0, so
    the padding propagates as exact zeros and the masked mean reduces to a
    plain lane-sum scaled by 1/action_dim.
    """
    def kernel(*refs):
        x_ref = refs[0]
        idx = 1
        h = x_ref[...].astype(jnp.float32)

        # Shared trunk: NoisyLinear -> GELU, unrolled at trace time.
        for _ in range(num_shared_layers):
            w_ref, b_ref = refs[idx], refs[idx + 1]
            idx += 2
            h = _gelu(_linear_nt(h, w_ref, b_ref))

        wv1_ref, bv1_ref, wv2_ref, bv2_ref = refs[idx:idx + 4]
        idx += 4
        wa1_ref, ba1_ref, wa2_ref, ba2_ref = refs[idx:idx + 4]
        idx += 4
        q_ref = refs[idx]

        # Value stream: hidden -> hidden -> 1
        hv = _gelu(_linear_nt(h, wv1_ref, bv1_ref))
        # Final value layer has a single output; do it as a VPU mul + lane
        # reduction instead of a degenerate 1-column matmul.
        v = jnp.sum(hv * wv2_ref[...], axis=-1, keepdims=True) + bv2_ref[...]

        # Advantage stream: hidden -> hidden -> action_dim (lane-padded to 128)
        ha = _gelu(_linear_nt(h, wa1_ref, ba1_ref))
        a = _linear_nt(ha, wa2_ref, ba2_ref)          # padded cols are exactly 0

        a_mean = jnp.sum(a, axis=-1, keepdims=True) * inv_num_actions
        q_ref[...] = (v + (a - a_mean)).astype(q_ref.dtype)

    return kernel


# ----------------------------------------------------------------------------
# Parameter init (mirrors NoisyLinear.__init__ / reset_parameters / reset_noise)
# ----------------------------------------------------------------------------
def _scale_noise(key, size):
    x = jax.random.normal(key, (size,), dtype=jnp.float32)
    return jnp.sign(x) * jnp.sqrt(jnp.abs(x))


def init_noisy_linear(key, in_features, out_features, base_sigma=0.5):
    k_wmu, k_bmu, k_ein, k_eout = jax.random.split(key, 4)
    mu_range = 1.0 / math.sqrt(in_features)
    sigma_init = base_sigma / math.sqrt(in_features)
    weight_mu = jax.random.uniform(k_wmu, (out_features, in_features),
                                   jnp.float32, -mu_range, mu_range)
    bias_mu = jax.random.uniform(k_bmu, (out_features,),
                                 jnp.float32, -mu_range, mu_range)
    weight_sigma = jnp.full((out_features, in_features), sigma_init, jnp.float32)
    bias_sigma = jnp.full((out_features,), sigma_init, jnp.float32)
    eps_in = _scale_noise(k_ein, in_features)
    eps_out = _scale_noise(k_eout, out_features)
    return dict(weight_mu=weight_mu, weight_sigma=weight_sigma,
                weight_epsilon=jnp.outer(eps_out, eps_in),
                bias_mu=bias_mu, bias_sigma=bias_sigma, bias_epsilon=eps_out)


def init_dueling_dqn(key, state_dim, action_dim, hidden_dim=128,
                     num_hidden_layers=2, base_sigma=0.5):
    keys = jax.random.split(key, num_hidden_layers + 4)
    shared = [init_noisy_linear(keys[0], state_dim, hidden_dim, base_sigma)]
    for i in range(1, num_hidden_layers):
        shared.append(init_noisy_linear(keys[i], hidden_dim, hidden_dim, base_sigma))
    value = [init_noisy_linear(keys[num_hidden_layers], hidden_dim, hidden_dim, base_sigma),
             init_noisy_linear(keys[num_hidden_layers + 1], hidden_dim, 1, base_sigma)]
    adv = [init_noisy_linear(keys[num_hidden_layers + 2], hidden_dim, hidden_dim, base_sigma),
           init_noisy_linear(keys[num_hidden_layers + 3], hidden_dim, action_dim, base_sigma)]
    return dict(shared=shared, value=value, adv=adv)


# ----------------------------------------------------------------------------
# One-time (per reset_noise) parameter pre-combine + TPU padding
# ----------------------------------------------------------------------------
def _round_up(n, m):
    return ((n + m - 1) // m) * m


def _combine(p):
    w = p["weight_mu"] + p["weight_sigma"] * p["weight_epsilon"]
    b = p["bias_mu"] + p["bias_sigma"] * p["bias_epsilon"]
    return w, b


def prepare_dueling_params(params, state_dim, action_dim, hidden_dim):
    """Pre-combine noisy weights (done once per reset_noise, not per forward)
    and pad every tensor to lane/sublane-friendly shapes."""
    s_pad = _round_up(state_dim, 128)
    h_pad = _round_up(hidden_dim, 128)
    a_pad = _round_up(action_dim, 128)

    def pad_wb(p, out_pad, in_pad):
        w, b = _combine(p)
        w = jnp.pad(w, ((0, out_pad - w.shape[0]), (0, in_pad - w.shape[1])))
        b = jnp.pad(b, ((0, out_pad - b.shape[0]),)).reshape(1, out_pad)
        return [w, b]

    flat = []
    shared = params["shared"]
    flat += pad_wb(shared[0], h_pad, s_pad)
    for p in shared[1:]:
        flat += pad_wb(p, h_pad, h_pad)

    flat += pad_wb(params["value"][0], h_pad, h_pad)
    wv2, bv2 = _combine(params["value"][1])                    # [1, hidden], [1]
    flat += [jnp.pad(wv2, ((0, 0), (0, h_pad - wv2.shape[1]))),
             bv2.reshape(1, 1)]

    flat += pad_wb(params["adv"][0], h_pad, h_pad)
    flat += pad_wb(params["adv"][1], a_pad, h_pad)

    return flat, (s_pad, h_pad, a_pad)


# ----------------------------------------------------------------------------
# Forward wrapper
# ----------------------------------------------------------------------------
def dueling_dqn_forward(x, flat_params, pads, action_dim, num_shared_layers):
    s_pad, h_pad, a_pad = pads
    batch, state_dim = x.shape

    if batch > 128:
        tb = 128
        b_pad = _round_up(batch, tb)
    else:
        b_pad = _round_up(batch, 8)
        tb = b_pad

    x_pad = jnp.pad(x.astype(jnp.float32),
                    ((0, b_pad - batch), (0, s_pad - state_dim)))

    kernel = _make_dueling_kernel(num_shared_layers, 1.0 / float(action_dim))

    def full_spec(arr):
        return pl.BlockSpec(arr.shape, lambda i: (0, 0))   # weights resident across grid

    in_specs = [pl.BlockSpec((tb, s_pad), lambda i: (i, 0))]
    in_specs += [full_spec(p) for p in flat_params]

    q_pad = pl.pallas_call(
        kernel,
        out_shape=jax.ShapeDtypeStruct((b_pad, a_pad), jnp.float32),
        grid=(b_pad // tb,),
        in_specs=in_specs,
        out_specs=pl.BlockSpec((tb, a_pad), lambda i: (i, 0)),
        compiler_params=pltpu.CompilerParams(
            dimension_semantics=("parallel",)),   # batch tiles shard across TCs on v7x
    )(x_pad, *flat_params)

    return q_pad[:batch, :action_dim]


# ----------------------------------------------------------------------------
# Pure-JAX reference (exact module semantics) for correctness check
# ----------------------------------------------------------------------------
def _reference_forward(x, params, action_dim):
    hp = jax.lax.Precision.HIGHEST

    def nl(h, p):
        w, b = _combine(p)
        return jnp.dot(h, w.T, precision=hp) + b

    def gelu(t):
        return jax.nn.gelu(t, approximate=False)

    h = x
    for p in params["shared"]:
        h = gelu(nl(h, p))
    v = nl(gelu(nl(h, params["value"][0])), params["value"][1])
    a = nl(gelu(nl(h, params["adv"][0])), params["adv"][1])
    return v + (a - a.mean(axis=1, keepdims=True))


if __name__ == "__main__":
    key = jax.random.PRNGKey(0)
    k_params, k_x = jax.random.split(key)

    batch, state_dim, action_dim = 8, 16, 6
    hidden_dim, num_hidden_layers = 128, 2

    params = init_dueling_dqn(k_params, state_dim, action_dim,
                              hidden_dim, num_hidden_layers, base_sigma=0.5)
    x = jax.random.normal(k_x, (batch, state_dim), dtype=jnp.float32)

    # Pre-combined + padded params: computed once (per reset_noise), reused per forward.
    flat_params, pads = prepare_dueling_params(params, state_dim, action_dim, hidden_dim)

    q = dueling_dqn_forward(x, flat_params, pads, action_dim, num_hidden_layers)
    q = jax.block_until_ready(q)

    ref = _reference_forward(x, params, action_dim)

    assert q.shape == (batch, action_dim)
    assert jnp.allclose(q, ref, atol=1e-3, rtol=1e-3), \
        float(jnp.max(jnp.abs(q - ref)))

    print("KERNEL_OK")
</pallas_src>

<mosaic_0001>
module attributes {stable_mosaic.version = 11 : i64} {
  func.func @kernel(%arg0: i32, %arg1: memref<8x128xf32, #tpu.memory_space<vmem>>, %arg2: memref<128x128xf32, #tpu.memory_space<vmem>>, %arg3: memref<1x128xf32, #tpu.memory_space<vmem>>, %arg4: memref<128x128xf32, #tpu.memory_space<vmem>>, %arg5: memref<1x128xf32, #tpu.memory_space<vmem>>, %arg6: memref<128x128xf32, #tpu.memory_space<vmem>>, %arg7: memref<1x128xf32, #tpu.memory_space<vmem>>, %arg8: memref<1x128xf32, #tpu.memory_space<vmem>>, %arg9: memref<1x1xf32, #tpu.memory_space<vmem>>, %arg10: memref<128x128xf32, #tpu.memory_space<vmem>>, %arg11: memref<1x128xf32, #tpu.memory_space<vmem>>, %arg12: memref<128x128xf32, #tpu.memory_space<vmem>>, %arg13: memref<1x128xf32, #tpu.memory_space<vmem>>, %arg14: memref<8x128xf32, #tpu.memory_space<vmem>>) attributes {dimension_semantics = [#tpu.dimension_semantics<parallel>], iteration_bounds = array<i64: 1>, scalar_prefetch = 0 : i64, scratch_operands = 0 : i64, tpu.core_type = #tpu.core_type<tc>, window_params = [{transform_indices = @transform_0, window_bounds = array<i64: 8, 128>}, {pipeline_mode = #tpu.pipeline_mode<synchronous>, transform_indices = @transform_1, window_bounds = array<i64: 128, 128>}, {pipeline_mode = #tpu.pipeline_mode<synchronous>, transform_indices = @transform_2, window_bounds = array<i64: 1, 128>}, {pipeline_mode = #tpu.pipeline_mode<synchronous>, transform_indices = @transform_3, window_bounds = array<i64: 128, 128>}, {pipeline_mode = #tpu.pipeline_mode<synchronous>, transform_indices = @transform_4, window_bounds = array<i64: 1, 128>}, {pipeline_mode = #tpu.pipeline_mode<synchronous>, transform_indices = @transform_5, window_bounds = array<i64: 128, 128>}, {pipeline_mode = #tpu.pipeline_mode<synchronous>, transform_indices = @transform_6, window_bounds = array<i64: 1, 128>}, {pipeline_mode = #tpu.pipeline_mode<synchronous>, transform_indices = @transform_7, window_bounds = array<i64: 1, 128>}, {pipeline_mode = #tpu.pipeline_mode<synchronous>, transform_indices = @transform_8, window_bounds = array<i64: 1, 1>}, {pipeline_mode = #tpu.pipeline_mode<synchronous>, transform_indices = @transform_9, window_bounds = array<i64: 128, 128>}, {pipeline_mode = #tpu.pipeline_mode<synchronous>, transform_indices = @transform_10, window_bounds = array<i64: 1, 128>}, {pipeline_mode = #tpu.pipeline_mode<synchronous>, transform_indices = @transform_11, window_bounds = array<i64: 128, 128>}, {pipeline_mode = #tpu.pipeline_mode<synchronous>, transform_indices = @transform_12, window_bounds = array<i64: 1, 128>}, {transform_indices = @transform_13, window_bounds = array<i64: 8, 128>}]} {
    %c0 = arith.constant 0 : index
    %c0_0 = arith.constant 0 : index
    %0 = vector.load %arg1[%c0, %c0_0] : memref<8x128xf32, #tpu.memory_space<vmem>>, vector<8x128xf32>
    %c0_1 = arith.constant 0 : index
    %c0_2 = arith.constant 0 : index
    %1 = vector.load %arg2[%c0_1, %c0_2] : memref<128x128xf32, #tpu.memory_space<vmem>>, vector<128x128xf32>
    %cst = arith.constant dense<0.000000e+00> : vector<8x128xf32>
    %2 = tpu.matmul %0, %1, %cst {dimension_numbers = #tpu.dot_dimension_numbers<[1], [1], [0], [0], [0, 0, 1, 0], [], []>} : vector<8x128xf32>, vector<128x128xf32>, vector<8x128xf32> -> vector<8x128xf32>
    %c0_3 = arith.constant 0 : index
    %c0_4 = arith.constant 0 : index
    %3 = vector.load %arg3[%c0_3, %c0_4] : memref<1x128xf32, #tpu.memory_space<vmem>>, vector<1x128xf32>
    %4 = vector.broadcast %3 : vector<1x128xf32> to vector<8x128xf32>
    %5 = arith.addf %2, %4 : vector<8x128xf32>
    %cst_5 = arith.constant 5.000000e-01 : f32
    %6 = vector.broadcast %cst_5 : f32 to vector<8x128xf32>
    %7 = arith.mulf %6, %5 : vector<8x128xf32>
    %cst_6 = arith.constant 0.707106769 : f32
    %8 = vector.broadcast %cst_6 : f32 to vector<8x128xf32>
    %9 = arith.mulf %5, %8 : vector<8x128xf32>
    %cst_7 = arith.constant 0.000000e+00 : f32
    %10 = vector.broadcast %cst_7 : f32 to vector<8x128xf32>
    %11 = arith.cmpf olt, %9, %10 : vector<8x128xf32>
    %cst_8 = arith.constant -1.000000e+00 : f32
    %cst_9 = arith.constant 1.000000e+00 : f32
    %12 = vector.broadcast %cst_8 : f32 to vector<8x128xf32>
    %13 = vector.broadcast %cst_9 : f32 to vector<8x128xf32>
    %14 = arith.select %11, %12, %13 : vector<8x128xi1>, vector<8x128xf32>
    %15 = math.absf %9 : vector<8x128xf32>
    %cst_10 = arith.constant 0.327591091 : f32
    %16 = vector.broadcast %cst_10 : f32 to vector<8x128xf32>
    %17 = arith.mulf %16, %15 : vector<8x128xf32>
    %cst_11 = arith.constant 1.000000e+00 : f32
    %18 = vector.broadcast %cst_11 : f32 to vector<8x128xf32>
    %19 = arith.addf %18, %17 : vector<8x128xf32>
    %cst_12 = arith.constant 1.000000e+00 : f32
    %20 = vector.broadcast %cst_12 : f32 to vector<8x128xf32>
    %21 = arith.divf %20, %19 : vector<8x128xf32>
    %cst_13 = arith.constant 1.06140542 : f32
    %22 = vector.broadcast %cst_13 : f32 to vector<8x128xf32>
    %23 = arith.mulf %22, %21 : vector<8x128xf32>
    %cst_14 = arith.constant -1.45315206 : f32
    %24 = vector.broadcast %cst_14 : f32 to vector<8x128xf32>
    %25 = arith.addf %23, %24 : vector<8x128xf32>
    %26 = arith.mulf %25, %21 : vector<8x128xf32>
    %cst_15 = arith.constant 1.42141378 : f32
    %27 = vector.broadcast %cst_15 : f32 to vector<8x128xf32>
    %28 = arith.addf %26, %27 : vector<8x128xf32>
    %29 = arith.mulf %28, %21 : vector<8x128xf32>
    %cst_16 = arith.constant -0.284496725 : f32
    %30 = vector.broadcast %cst_16 : f32 to vector<8x128xf32>
    %31 = arith.addf %29, %30 : vector<8x128xf32>
    %32 = arith.mulf %31, %21 : vector<8x128xf32>
    %cst_17 = arith.constant 0.254829586 : f32
    %33 = vector.broadcast %cst_17 : f32 to vector<8x128xf32>
    %34 = arith.addf %32, %33 : vector<8x128xf32>
    %35 = arith.mulf %34, %21 : vector<8x128xf32>
    %cst_18 = arith.constant 0.000000e+00 : f32
    %36 = vector.broadcast %cst_18 : f32 to vector<8x128xf32>
    %37 = arith.subf %36, %15 : vector<8x128xf32>
    %38 = arith.mulf %37, %15 : vector<8x128xf32>
    %39 = math.exp %38 : vector<8x128xf32>
    %40 = arith.mulf %35, %39 : vector<8x128xf32>
    %cst_19 = arith.constant 1.000000e+00 : f32
    %41 = vector.broadcast %cst_19 : f32 to vector<8x128xf32>
    %42 = arith.subf %41, %40 : vector<8x128xf32>
    %43 = arith.mulf %14, %42 : vector<8x128xf32>
    %cst_20 = arith.constant 1.000000e+00 : f32
    %44 = vector.broadcast %cst_20 : f32 to vector<8x128xf32>
    %45 = arith.addf %44, %43 : vector<8x128xf32>
    %46 = arith.mulf %7, %45 : vector<8x128xf32>
    %c0_21 = arith.constant 0 : index
    %c0_22 = arith.constant 0 : index
    %47 = vector.load %arg4[%c0_21, %c0_22] : memref<128x128xf32, #tpu.memory_space<vmem>>, vector<128x128xf32>
    %cst_23 = arith.constant dense<0.000000e+00> : vector<8x128xf32>
    %48 = tpu.matmul %46, %47, %cst_23 {dimension_numbers = #tpu.dot_dimension_numbers<[1], [1], [0], [0], [0, 0, 1, 0], [], []>} : vector<8x128xf32>, vector<128x128xf32>, vector<8x128xf32> -> vector<8x128xf32>
    %c0_24 = arith.constant 0 : index
    %c0_25 = arith.constant 0 : index
    %49 = vector.load %arg5[%c0_24, %c0_25] : memref<1x128xf32, #tpu.memory_space<vmem>>, vector<1x128xf32>
    %50 = vector.broadcast %49 : vector<1x128xf32> to vector<8x128xf32>
    %51 = arith.addf %48, %50 : vector<8x128xf32>
    %cst_26 = arith.constant 5.000000e-01 : f32
    %52 = vector.broadcast %cst_26 : f32 to vector<8x128xf32>
    %53 = arith.mulf %52, %51 : vector<8x128xf32>
    %cst_27 = arith.constant 0.707106769 : f32
    %54 = vector.broadcast %cst_27 : f32 to vector<8x128xf32>
    %55 = arith.mulf %51, %54 : vector<8x128xf32>
    %cst_28 = arith.constant 0.000000e+00 : f32
    %56 = vector.broadcast %cst_28 : f32 to vector<8x128xf32>
    %57 = arith.cmpf olt, %55, %56 : vector<8x128xf32>
    %cst_29 = arith.constant -1.000000e+00 : f32
    %cst_30 = arith.constant 1.000000e+00 : f32
    %58 = vector.broadcast %cst_29 : f32 to vector<8x128xf32>
    %59 = vector.broadcast %cst_30 : f32 to vector<8x128xf32>
    %60 = arith.select %57, %58, %59 : vector<8x128xi1>, vector<8x128xf32>
    %61 = math.absf %55 : vector<8x128xf32>
    %cst_31 = arith.constant 0.327591091 : f32
    %62 = vector.broadcast %cst_31 : f32 to vector<8x128xf32>
    %63 = arith.mulf %62, %61 : vector<8x128xf32>
    %cst_32 = arith.constant 1.000000e+00 : f32
    %64 = vector.broadcast %cst_32 : f32 to vector<8x128xf32>
    %65 = arith.addf %64, %63 : vector<8x128xf32>
    %cst_33 = arith.constant 1.000000e+00 : f32
    %66 = vector.broadcast %cst_33 : f32 to vector<8x128xf32>
    %67 = arith.divf %66, %65 : vector<8x128xf32>
    %cst_34 = arith.constant 1.06140542 : f32
    %68 = vector.broadcast %cst_34 : f32 to vector<8x128xf32>
    %69 = arith.mulf %68, %67 : vector<8x128xf32>
    %cst_35 = arith.constant -1.45315206 : f32
    %70 = vector.broadcast %cst_35 : f32 to vector<8x128xf32>
    %71 = arith.addf %69, %70 : vector<8x128xf32>
    %72 = arith.mulf %71, %67 : vector<8x128xf32>
    %cst_36 = arith.constant 1.42141378 : f32
    %73 = vector.broadcast %cst_36 : f32 to vector<8x128xf32>
    %74 = arith.addf %72, %73 : vector<8x128xf32>
    %75 = arith.mulf %74, %67 : vector<8x128xf32>
    %cst_37 = arith.constant -0.284496725 : f32
    %76 = vector.broadcast %cst_37 : f32 to vector<8x128xf32>
    %77 = arith.addf %75, %76 : vector<8x128xf32>
    %78 = arith.mulf %77, %67 : vector<8x128xf32>
    %cst_38 = arith.constant 0.254829586 : f32
    %79 = vector.broadcast %cst_38 : f32 to vector<8x128xf32>
    %80 = arith.addf %78, %79 : vector<8x128xf32>
    %81 = arith.mulf %80, %67 : vector<8x128xf32>
    %cst_39 = arith.constant 0.000000e+00 : f32
    %82 = vector.broadcast %cst_39 : f32 to vector<8x128xf32>
    %83 = arith.subf %82, %61 : vector<8x128xf32>
    %84 = arith.mulf %83, %61 : vector<8x128xf32>
    %85 = math.exp %84 : vector<8x128xf32>
    %86 = arith.mulf %81, %85 : vector<8x128xf32>
    %cst_40 = arith.constant 1.000000e+00 : f32
    %87 = vector.broadcast %cst_40 : f32 to vector<8x128xf32>
    %88 = arith.subf %87, %86 : vector<8x128xf32>
    %89 = arith.mulf %60, %88 : vector<8x128xf32>
    %cst_41 = arith.constant 1.000000e+00 : f32
    %90 = vector.broadcast %cst_41 : f32 to vector<8x128xf32>
    %91 = arith.addf %90, %89 : vector<8x128xf32>
    %92 = arith.mulf %53, %91 : vector<8x128xf32>
    %c0_42 = arith.constant 0 : index
    %c0_43 = arith.constant 0 : index
    %93 = vector.load %arg6[%c0_42, %c0_43] : memref<128x128xf32, #tpu.memory_space<vmem>>, vector<128x128xf32>
    %cst_44 = arith.constant dense<0.000000e+00> : vector<8x128xf32>
    %94 = tpu.matmul %92, %93, %cst_44 {dimension_numbers = #tpu.dot_dimension_numbers<[1], [1], [0], [0], [0, 0, 1, 0], [], []>} : vector<8x128xf32>, vector<128x128xf32>, vector<8x128xf32> -> vector<8x128xf32>
    %c0_45 = arith.constant 0 : index
    %c0_46 = arith.constant 0 : index
    %95 = vector.load %arg7[%c0_45, %c0_46] : memref<1x128xf32, #tpu.memory_space<vmem>>, vector<1x128xf32>
    %96 = vector.broadcast %95 : vector<1x128xf32> to vector<8x128xf32>
    %97 = arith.addf %94, %96 : vector<8x128xf32>
    %cst_47 = arith.constant 5.000000e-01 : f32
    %98 = vector.broadcast %cst_47 : f32 to vector<8x128xf32>
    %99 = arith.mulf %98, %97 : vector<8x128xf32>
    %cst_48 = arith.constant 0.707106769 : f32
    %100 = vector.broadcast %cst_48 : f32 to vector<8x128xf32>
    %101 = arith.mulf %97, %100 : vector<8x128xf32>
    %cst_49 = arith.constant 0.000000e+00 : f32
    %102 = vector.broadcast %cst_49 : f32 to vector<8x128xf32>
    %103 = arith.cmpf olt, %101, %102 : vector<8x128xf32>
    %cst_50 = arith.constant -1.000000e+00 : f32
    %cst_51 = arith.constant 1.000000e+00 : f32
    %104 = vector.broadcast %cst_50 : f32 to vector<8x128xf32>
    %105 = vector.broadcast %cst_51 : f32 to vector<8x128xf32>
    %106 = arith.select %103, %104, %105 : vector<8x128xi1>, vector<8x128xf32>
    %107 = math.absf %101 : vector<8x128xf32>
    %cst_52 = arith.constant 0.327591091 : f32
    %108 = vector.broadcast %cst_52 : f32 to vector<8x128xf32>
    %109 = arith.mulf %108, %107 : vector<8x128xf32>
    %cst_53 = arith.constant 1.000000e+00 : f32
    %110 = vector.broadcast %cst_53 : f32 to vector<8x128xf32>
    %111 = arith.addf %110, %109 : vector<8x128xf32>
    %cst_54 = arith.constant 1.000000e+00 : f32
    %112 = vector.broadcast %cst_54 : f32 to vector<8x128xf32>
    %113 = arith.divf %112, %111 : vector<8x128xf32>
    %cst_55 = arith.constant 1.06140542 : f32
    %114 = vector.broadcast %cst_55 : f32 to vector<8x128xf32>
    %115 = arith.mulf %114, %113 : vector<8x128xf32>
    %cst_56 = arith.constant -1.45315206 : f32
    %116 = vector.broadcast %cst_56 : f32 to vector<8x128xf32>
    %117 = arith.addf %115, %116 : vector<8x128xf32>
    %118 = arith.mulf %117, %113 : vector<8x128xf32>
    %cst_57 = arith.constant 1.42141378 : f32
    %119 = vector.broadcast %cst_57 : f32 to vector<8x128xf32>
    %120 = arith.addf %118, %119 : vector<8x128xf32>
    %121 = arith.mulf %120, %113 : vector<8x128xf32>
    %cst_58 = arith.constant -0.284496725 : f32
    %122 = vector.broadcast %cst_58 : f32 to vector<8x128xf32>
    %123 = arith.addf %121, %122 : vector<8x128xf32>
    %124 = arith.mulf %123, %113 : vector<8x128xf32>
    %cst_59 = arith.constant 0.254829586 : f32
    %125 = vector.broadcast %cst_59 : f32 to vector<8x128xf32>
    %126 = arith.addf %124, %125 : vector<8x128xf32>
    %127 = arith.mulf %126, %113 : vector<8x128xf32>
    %cst_60 = arith.constant 0.000000e+00 : f32
    %128 = vector.broadcast %cst_60 : f32 to vector<8x128xf32>
    %129 = arith.subf %128, %107 : vector<8x128xf32>
    %130 = arith.mulf %129, %107 : vector<8x128xf32>
    %131 = math.exp %130 : vector<8x128xf32>
    %132 = arith.mulf %127, %131 : vector<8x128xf32>
    %cst_61 = arith.constant 1.000000e+00 : f32
    %133 = vector.broadcast %cst_61 : f32 to vector<8x128xf32>
    %134 = arith.subf %133, %132 : vector<8x128xf32>
    %135 = arith.mulf %106, %134 : vector<8x128xf32>
    %cst_62 = arith.constant 1.000000e+00 : f32
    %136 = vector.broadcast %cst_62 : f32 to vector<8x128xf32>
    %137 = arith.addf %136, %135 : vector<8x128xf32>
    %138 = arith.mulf %99, %137 : vector<8x128xf32>
    %c0_63 = arith.constant 0 : index
    %c0_64 = arith.constant 0 : index
    %139 = vector.load %arg8[%c0_63, %c0_64] : memref<1x128xf32, #tpu.memory_space<vmem>>, vector<1x128xf32>
    %140 = vector.broadcast %139 : vector<1x128xf32> to vector<8x128xf32>
    %141 = arith.mulf %138, %140 : vector<8x128xf32>
    %cst_65 = arith.constant dense<0.000000e+00> : vector<8xf32>
    %142 = vector.multi_reduction <add>, %141, %cst_65 [1] : vector<8x128xf32> to vector<8xf32>
    %143 = vector.shape_cast %142 : vector<8xf32> to vector<8x1xf32>
    %c0_66 = arith.constant 0 : index
    %c0_67 = arith.constant 0 : index
    %144 = vector.load %arg9[%c0_66, %c0_67] : memref<1x1xf32, #tpu.memory_space<vmem>>, vector<1x1xf32>
    %145 = vector.broadcast %144 : vector<1x1xf32> to vector<8x1xf32>
    %146 = arith.addf %143, %145 : vector<8x1xf32>
    %c0_68 = arith.constant 0 : index
    %c0_69 = arith.constant 0 : index
    %147 = vector.load %arg10[%c0_68, %c0_69] : memref<128x128xf32, #tpu.memory_space<vmem>>, vector<128x128xf32>
    %cst_70 = arith.constant dense<0.000000e+00> : vector<8x128xf32>
    %148 = tpu.matmul %92, %147, %cst_70 {dimension_numbers = #tpu.dot_dimension_numbers<[1], [1], [0], [0], [0, 0, 1, 0], [], []>} : vector<8x128xf32>, vector<128x128xf32>, vector<8x128xf32> -> vector<8x128xf32>
    %c0_71 = arith.constant 0 : index
    %c0_72 = arith.constant 0 : index
    %149 = vector.load %arg11[%c0_71, %c0_72] : memref<1x128xf32, #tpu.memory_space<vmem>>, vector<1x128xf32>
    %150 = vector.broadcast %149 : vector<1x128xf32> to vector<8x128xf32>
    %151 = arith.addf %148, %150 : vector<8x128xf32>
    %cst_73 = arith.constant 5.000000e-01 : f32
    %152 = vector.broadcast %cst_73 : f32 to vector<8x128xf32>
    %153 = arith.mulf %152, %151 : vector<8x128xf32>
    %cst_74 = arith.constant 0.707106769 : f32
    %154 = vector.broadcast %cst_74 : f32 to vector<8x128xf32>
    %155 = arith.mulf %151, %154 : vector<8x128xf32>
    %cst_75 = arith.constant 0.000000e+00 : f32
    %156 = vector.broadcast %cst_75 : f32 to vector<8x128xf32>
    %157 = arith.cmpf olt, %155, %156 : vector<8x128xf32>
    %cst_76 = arith.constant -1.000000e+00 : f32
    %cst_77 = arith.constant 1.000000e+00 : f32
    %158 = vector.broadcast %cst_76 : f32 to vector<8x128xf32>
    %159 = vector.broadcast %cst_77 : f32 to vector<8x128xf32>
    %160 = arith.select %157, %158, %159 : vector<8x128xi1>, vector<8x128xf32>
    %161 = math.absf %155 : vector<8x128xf32>
    %cst_78 = arith.constant 0.327591091 : f32
    %162 = vector.broadcast %cst_78 : f32 to vector<8x128xf32>
    %163 = arith.mulf %162, %161 : vector<8x128xf32>
    %cst_79 = arith.constant 1.000000e+00 : f32
    %164 = vector.broadcast %cst_79 : f32 to vector<8x128xf32>
    %165 = arith.addf %164, %163 : vector<8x128xf32>
    %cst_80 = arith.constant 1.000000e+00 : f32
    %166 = vector.broadcast %cst_80 : f32 to vector<8x128xf32>
    %167 = arith.divf %166, %165 : vector<8x128xf32>
    %cst_81 = arith.constant 1.06140542 : f32
    %168 = vector.broadcast %cst_81 : f32 to vector<8x128xf32>
    %169 = arith.mulf %168, %167 : vector<8x128xf32>
    %cst_82 = arith.constant -1.45315206 : f32
    %170 = vector.broadcast %cst_82 : f32 to vector<8x128xf32>
    %171 = arith.addf %169, %170 : vector<8x128xf32>
    %172 = arith.mulf %171, %167 : vector<8x128xf32>
    %cst_83 = arith.constant 1.42141378 : f32
    %173 = vector.broadcast %cst_83 : f32 to vector<8x128xf32>
    %174 = arith.addf %172, %173 : vector<8x128xf32>
    %175 = arith.mulf %174, %167 : vector<8x128xf32>
    %cst_84 = arith.constant -0.284496725 : f32
    %176 = vector.broadcast %cst_84 : f32 to vector<8x128xf32>
    %177 = arith.addf %175, %176 : vector<8x128xf32>
    %178 = arith.mulf %177, %167 : vector<8x128xf32>
    %cst_85 = arith.constant 0.254829586 : f32
    %179 = vector.broadcast %cst_85 : f32 to vector<8x128xf32>
    %180 = arith.addf %178, %179 : vector<8x128xf32>
    %181 = arith.mulf %180, %167 : vector<8x128xf32>
    %cst_86 = arith.constant 0.000000e+00 : f32
    %182 = vector.broadcast %cst_86 : f32 to vector<8x128xf32>
    %183 = arith.subf %182, %161 : vector<8x128xf32>
    %184 = arith.mulf %183, %161 : vector<8x128xf32>
    %185 = math.exp %184 : vector<8x128xf32>
    %186 = arith.mulf %181, %185 : vector<8x128xf32>
    %cst_87 = arith.constant 1.000000e+00 : f32
    %187 = vector.broadcast %cst_87 : f32 to vector<8x128xf32>
    %188 = arith.subf %187, %186 : vector<8x128xf32>
    %189 = arith.mulf %160, %188 : vector<8x128xf32>
    %cst_88 = arith.constant 1.000000e+00 : f32
    %190 = vector.broadcast %cst_88 : f32 to vector<8x128xf32>
    %191 = arith.addf %190, %189 : vector<8x128xf32>
    %192 = arith.mulf %153, %191 : vector<8x128xf32>
    %c0_89 = arith.constant 0 : index
    %c0_90 = arith.constant 0 : index
    %193 = vector.load %arg12[%c0_89, %c0_90] : memref<128x128xf32, #tpu.memory_space<vmem>>, vector<128x128xf32>
    %cst_91 = arith.constant dense<0.000000e+00> : vector<8x128xf32>
    %194 = tpu.matmul %192, %193, %cst_91 {dimension_numbers = #tpu.dot_dimension_numbers<[1], [1], [0], [0], [0, 0, 1, 0], [], []>} : vector<8x128xf32>, vector<128x128xf32>, vector<8x128xf32> -> vector<8x128xf32>
    %c0_92 = arith.constant 0 : index
    %c0_93 = arith.constant 0 : index
    %195 = vector.load %arg13[%c0_92, %c0_93] : memref<1x128xf32, #tpu.memory_space<vmem>>, vector<1x128xf32>
    %196 = vector.broadcast %195 : vector<1x128xf32> to vector<8x128xf32>
    %197 = arith.addf %194, %196 : vector<8x128xf32>
    %cst_94 = arith.constant dense<0.000000e+00> : vector<8xf32>
    %198 = vector.multi_reduction <add>, %197, %cst_94 [1] : vector<8x128xf32> to vector<8xf32>
    %199 = vector.shape_cast %198 : vector<8xf32> to vector<8x1xf32>
    %cst_95 = arith.constant 0.166666672 : f32
    %200 = vector.broadcast %cst_95 : f32 to vector<8x1xf32>
    %201 = arith.mulf %199, %200 : vector<8x1xf32>
    %202 = vector.broadcast %201 : vector<8x1xf32> to vector<8x128xf32>
    %203 = arith.subf %197, %202 : vector<8x128xf32>
    %204 = vector.broadcast %146 : vector<8x1xf32> to vector<8x128xf32>
    %205 = arith.addf %204, %203 : vector<8x128xf32>
    %c0_96 = arith.constant 0 : index
    %c0_97 = arith.constant 0 : index
    %206 = vector.load %arg14[%c0_96, %c0_97] : memref<8x128xf32, #tpu.memory_space<vmem>>, vector<8x128xf32>
    tpu.vector_store %arg14[%c0_96, %c0_97], %205 {strides = array<i32>} : memref<8x128xf32, #tpu.memory_space<vmem>>, vector<8x128xf32>,
    return
  }
  func.func @transform_0(%arg0: i32) -> (i32, i32) {
    %c0_i32 = arith.constant 0 : i32
    %c0_i32_0 = arith.constant 0 : i32
    return %arg0, %c0_i32 : i32, i32
  }
  func.func @transform_1(%arg0: i32) -> (i32, i32) {
    %c0_i32 = arith.constant 0 : i32
    %c0_i32_0 = arith.constant 0 : i32
    %c0_i32_1 = arith.constant 0 : i32
    return %c0_i32, %c0_i32_0 : i32, i32
  }
  func.func @transform_2(%arg0: i32) -> (i32, i32) {
    %c0_i32 = arith.constant 0 : i32
    %c0_i32_0 = arith.constant 0 : i32
    %c0_i32_1 = arith.constant 0 : i32
    return %c0_i32, %c0_i32_0 : i32, i32
  }
  func.func @transform_3(%arg0: i32) -> (i32, i32) {
    %c0_i32 = arith.constant 0 : i32
    %c0_i32_0 = arith.constant 0 : i32
    %c0_i32_1 = arith.constant 0 : i32
    return %c0_i32, %c0_i32_0 : i32, i32
  }
  func.func @transform_4(%arg0: i32) -> (i32, i32) {
    %c0_i32 = arith.constant 0 : i32
    %c0_i32_0 = arith.constant 0 : i32
    %c0_i32_1 = arith.constant 0 : i32
    return %c0_i32, %c0_i32_0 : i32, i32
  }
  func.func @transform_5(%arg0: i32) -> (i32, i32) {
    %c0_i32 = arith.constant 0 : i32
    %c0_i32_0 = arith.constant 0 : i32
    %c0_i32_1 = arith.constant 0 : i32
    return %c0_i32, %c0_i32_0 : i32, i32
  }
  func.func @transform_6(%arg0: i32) -> (i32, i32) {
    %c0_i32 = arith.constant 0 : i32
    %c0_i32_0 = arith.constant 0 : i32
    %c0_i32_1 = arith.constant 0 : i32
    return %c0_i32, %c0_i32_0 : i32, i32
  }
  func.func @transform_7(%arg0: i32) -> (i32, i32) {
    %c0_i32 = arith.constant 0 : i32
    %c0_i32_0 = arith.constant 0 : i32
    %c0_i32_1 = arith.constant 0 : i32
    return %c0_i32, %c0_i32_0 : i32, i32
  }
  func.func @transform_8(%arg0: i32) -> (i32, i32) {
    %c0_i32 = arith.constant 0 : i32
    %c0_i32_0 = arith.constant 0 : i32
    %c0_i32_1 = arith.constant 0 : i32
    return %c0_i32, %c0_i32_0 : i32, i32
  }
  func.func @transform_9(%arg0: i32) -> (i32, i32) {
    %c0_i32 = arith.constant 0 : i32
    %c0_i32_0 = arith.constant 0 : i32
    %c0_i32_1 = arith.constant 0 : i32
    return %c0_i32, %c0_i32_0 : i32, i32
  }
  func.func @transform_10(%arg0: i32) -> (i32, i32) {
    %c0_i32 = arith.constant 0 : i32
    %c0_i32_0 = arith.constant 0 : i32
    %c0_i32_1 = arith.constant 0 : i32
    return %c0_i32, %c0_i32_0 : i32, i32
  }
  func.func @transform_11(%arg0: i32) -> (i32, i32) {
    %c0_i32 = arith.constant 0 : i32
    %c0_i32_0 = arith.constant 0 : i32
    %c0_i32_1 = arith.constant 0 : i32
    return %c0_i32, %c0_i32_0 : i32, i32
  }
  func.func @transform_12(%arg0: i32) -> (i32, i32) {
    %c0_i32 = arith.constant 0 : i32
    %c0_i32_0 = arith.constant 0 : i32
    %c0_i32_1 = arith.constant 0 : i32
    return %c0_i32, %c0_i32_0 : i32, i32
  }
  func.func @transform_13(%arg0: i32) -> (i32, i32) {
    %c0_i32 = arith.constant 0 : i32
    %c0_i32_0 = arith.constant 0 : i32
    return %arg0, %c0_i32 : i32, i32
  }
}

</mosaic_0001>

<bundles_post_ra>
// kernel: tpu_custom_call.1
= control target key start
LH: loop header
LB: loop body
LE: loop exit
PB: predicated region body
PF: predicated region fallthrough
CT: control target
= control target key end

     0   :  { %s919_s0 = inlined_call_operand.hbm [shape: f32[8,128], index: 0, kind: input, shape index: {}]   ;;  %s920_s1 = inlined_call_operand.hbm [shape: f32[128,128], index: 1, kind: input, shape index: {}]   ;;  %s921_s2 = inlined_call_operand.vmem [shape: f32[1,128], index: 2, kind: input, shape index: {}]   ;;  %s922_s3 = inlined_call_operand.hbm [shape: f32[128,128], index: 3, kind: input, shape index: {}]   ;;  %s923_s4 = inlined_call_operand.vmem [shape: f32[1,128], index: 4, kind: input, shape index: {}]   ;;  %s924_s5 = inlined_call_operand.hbm [shape: f32[128,128], index: 5, kind: input, shape index: {}]   ;;  %s925_s6 = inlined_call_operand.vmem [shape: f32[1,128], index: 6, kind: input, shape index: {}]   ;;  %s926_s7 = inlined_call_operand.vmem [shape: f32[1,128], index: 7, kind: input, shape index: {}]   ;;  %s927_s8 = inlined_call_operand.<no memory space> [shape: f32[1,1], index: 8, kind: input, shape index: {}]   ;;  %s928_s9 = inlined_call_operand.hbm [shape: f32[128,128], index: 9, kind: input, shape index: {}]   ;;  %s929_s10 = inlined_call_operand.vmem [shape: f32[1,128], index: 10, kind: input, shape index: {}]   ;;  %s930_s11 = inlined_call_operand.hbm [shape: f32[128,128], index: 11, kind: input, shape index: {}]   ;;  %s931_s12 = inlined_call_operand.vmem [shape: f32[1,128], index: 12, kind: input, shape index: {}]   ;;  %s932_s13 = inlined_call_operand.hbm [shape: f32[8,128], index: 13, kind: output, shape index: {}]  }
   0x1   :  { %v18_v0 = vstv %s927_s8 }
   0x2   :  { %19 = vst [vmem:[#allocation2] sm:$0x1] %v18_v0 }
   0x3   :  { %20 = vsyncpa [#allocation4], 0 }
   0x4   :  { %21 = vsyncpa [#allocation7], 0 }
   0x5   :  { %22 = vsyncpa [#allocation10], 0 }
   0x6   :  { %23 = vsyncpa [#allocation13], 0  ;;  %s40_s29 = sshll.u32 %s920_s1, 4  ;;  %s41_s29 = int_to_ptr.hbm [resolvable:$true] %s40_s29 }
   0x7   :  { %24 = vsyncpa [#allocation5], 0  ;;  %s757_s30 = smov [#allocation6]   ;;  %s70_s17 = sshll.u32 %s924_s5, 4  ;;  %s71_s17 = int_to_ptr.hbm [resolvable:$true] %s70_s17 }
   0x8   :  { %s42_s14 = sshll.u32 %s757_s30, 4  ;;  %s758_s18 = smov 128   ;;  %s43_s14 = int_to_ptr.vmem [resolvable:$true] %s42_s14 }
   0x9   :  { %s759_s8 = smov 8   ;;  %s760_s19 = smov [#allocation9]  }
   0xa   :  { %48 = dma.hbm_to_vmem [thread:$0]  %s41_s29, 2048, %s43_s14, [#allocation7], %s758_s18, %s758_s18, %s759_s8  }
   0xb   :  { %s72_s20 = sshll.u32 %s760_s19, 4  ;;  %s30_s22 = sshll.u32 %s919_s0, 4  ;;  %s73_s20 = int_to_ptr.vmem [resolvable:$true] %s72_s20  ;;  %s31_s22 = int_to_ptr.hbm [resolvable:$true] %s30_s22 }
   0xc   :  { %78 = dma.hbm_to_vmem [thread:$0]  %s71_s17, 2048, %s73_s20, [#allocation10], %s758_s18, %s758_s18, %s759_s8  }
   0xd   :  { %s55_s24 = sshll.u32 %s922_s3, 4  ;;  %s761_s25 = smov [#allocation3]   ;;  %s56_s24 = int_to_ptr.hbm [resolvable:$true] %s55_s24 }
   0xe   :  { %s32_s26 = sshll.u32 %s761_s25, 4  ;;  %s762_s27 = smov [#allocation8]   ;;  %s33_s26 = int_to_ptr.vmem [resolvable:$true] %s32_s26 }
   0xf   :  { %35 = dma.hbm_to_vmem [thread:$0]  %s31_s22, 128, %s33_s26, [#allocation4]  }
  0x10   :  { %s57_s28 = sshll.u32 %s762_s27, 4  ;;  %s89_s0 = sshll.u32 %s928_s9, 4  ;;  %s58_s28 = int_to_ptr.vmem [resolvable:$true] %s57_s28  ;;  %s90_s0 = int_to_ptr.hbm [resolvable:$true] %s89_s0 }
  0x11   :  { %63 = dma.hbm_to_vmem [thread:$0]  %s56_s24, 2048, %s58_s28, [#allocation7], %s758_s18, %s758_s18, %s759_s8  }
  0x12   :  { %s104_s3 = sshll.u32 %s930_s11, 4  ;;  %s763_s16 = smov [#allocation11]   ;;  %s105_s3 = int_to_ptr.hbm [resolvable:$true] %s104_s3 }
  0x13   :  { %s91_s17 = sshll.u32 %s763_s16, 4  ;;  %s764_s19 = smov [#allocation12]   ;;  %s92_s17 = int_to_ptr.vmem [resolvable:$true] %s91_s17 }
  0x14   :  { %97 = dma.hbm_to_vmem [thread:$0]  %s90_s0, 2048, %s92_s17, [#allocation10], %s758_s18, %s758_s18, %s759_s8  }
  0x15   :  { %s106_s9 = sshll.u32 %s764_s19, 4  ;;  %s107_s9 = int_to_ptr.vmem [resolvable:$true] %s106_s9 }
  0x16   :  { %112 = dma.hbm_to_vmem [thread:$0]  %s105_s3, 2048, %s107_s9, [#allocation13], %s758_s18, %s758_s18, %s759_s8  }
  0x17   :  { %747 = dma.done.wait [#allocation4], 128  }
  0x18   :  { %748 = vsyncadd [#allocation4], 4294967168 }
  0x19   :  { %749 = dma.done.wait [#allocation7], 4096  }
  0x1a   :  { %750 = vsyncadd [#allocation7], 4294963200 }
  0x1b   :  { %751 = dma.done.wait [#allocation10], 4096  }
  0x1c   :  { %752 = vsyncadd [#allocation10], 4294963200 }
  0x1d   :  { %753 = dma.done.wait [#allocation13], 2048  }
  0x1e   :  { %754 = vsyncadd [#allocation13], 4294965248  ;;  %v155_v1 = vld [vmem:[#allocation6 + $0x78] sm:$0xff]  ;;  %v154_v2 = vld [vmem:[#allocation6 + $0x70] sm:$0xff]  ;;  %s530_s26 = sshll.u32 %s932_s13, 4  ;;  %s531_s26 = int_to_ptr.hbm [resolvable:$true] %s530_s26 }
  0x1f   :  { %160 = vmatpush.xpose.msra.mxu0 %v155_v1  ;;  %v153_v3 = vld [vmem:[#allocation6 + $0x68] sm:$0xff]  ;;  %v152_v4 = vld [vmem:[#allocation6 + $0x60] sm:$0xff]  ;;  %v151_v5 = vld [vmem:[#allocation6 + $0x58] sm:$0xff] }
  0x20   :  { %v150_v6 = vld [vmem:[#allocation6 + $0x50] sm:$0xff]  ;;  %v149_v7 = vld [vmem:[#allocation6 + $0x48] sm:$0xff]  ;;  %v148_v8 = vld [vmem:[#allocation6 + $0x40] sm:$0xff] }
  0x21   :  { %v147_v9 = vld [vmem:[#allocation6 + $0x38] sm:$0xff]  ;;  %v146_v11 = vld [vmem:[#allocation6 + $0x30] sm:$0xff]  ;;  %v145_v13 = vld [vmem:[#allocation6 + $0x28] sm:$0xff] }
  0x22   :  { %v235_v10 = vld [vmem:[#allocation8 + $0x78] sm:$0xff]  ;;  %v234_v12 = vld [vmem:[#allocation8 + $0x70] sm:$0xff]  ;;  %v144_v14 = vld [vmem:[#allocation6 + $0x20] sm:$0xff] }
  0x23   :  { %161 = vmatpush.xpose.msra.mxu0 %v154_v2  ;;  %240 = vmatpush.xpose.msra.mxu1 %v235_v10  ;;  %v143_v15 = vld [vmem:[#allocation6 + $0x18] sm:$0xff]  ;;  %v142_v16 = vld [vmem:[#allocation6 + $0x10] sm:$0xff]  ;;  %v141_v17 = vld [vmem:[#allocation6 + $0x8] sm:$0xff] }
  0x24   :  { %v140_v18 = vld [vmem:[#allocation6] sm:$0xff]  ;;  %v139_v19 = vld [vmem:[#allocation3] sm:$0xff]  ;;  %v233_v20 = vld [vmem:[#allocation8 + $0x68] sm:$0xff] }
  0x25   :  { %v232_v21 = vld [vmem:[#allocation8 + $0x60] sm:$0xff]  ;;  %v231_v22 = vld [vmem:[#allocation8 + $0x58] sm:$0xff]  ;;  %v230_v23 = vld [vmem:[#allocation8 + $0x50] sm:$0xff] }
  0x26   :  { %v229_v24 = vld [vmem:[#allocation8 + $0x48] sm:$0xff]  ;;  %v228_v25 = vld [vmem:[#allocation8 + $0x40] sm:$0xff]  ;;  %v227_v26 = vld [vmem:[#allocation8 + $0x38] sm:$0xff] }
  0x27   :  { %162 = vmatpush.xpose.msra.mxu0 %v153_v3  ;;  %241 = vmatpush.xpose.msra.mxu1 %v234_v12  ;;  %v226_v27 = vld [vmem:[#allocation8 + $0x30] sm:$0xff]  ;;  %v225_v29 = vld [vmem:[#allocation8 + $0x28] sm:$0xff]  ;;  %v224_v32 = vld [vmem:[#allocation8 + $0x20] sm:$0xff] }
  0x28   :  { %v556_v28 = vld [vmem:[%s921_s2] ss:$0 sm:$0xff]  ;;  %v223_v35 = vld [vmem:[#allocation8 + $0x18] sm:$0xff]  ;;  %v221_v39 = vld [vmem:[#allocation8 + $0x8] sm:$0xff] }
  0x29   :  { %v222_v38 = vld [vmem:[#allocation8 + $0x10] sm:$0xff]  ;;  %v220_v42 = vld [vmem:[#allocation8] sm:$0xff]  ;;  %v315_v48 = vld [vmem:[#allocation9 + $0x78] sm:$0xff] }
  0x2a   :  { %v407_v49 = vld [vmem:[#allocation11 + $0x78] sm:$0xff]  ;;  %320 = vmatpush.xpose.msra.mxu2 %v315_v48  ;;  %v314_v52 = vld [vmem:[#allocation9 + $0x70] sm:$0xff]  ;;  %v313_v12 = vld [vmem:[#allocation9 + $0x68] sm:$0xff] }
  0x2b   :  { %163 = vmatpush.xpose.msra.mxu0 %v152_v4  ;;  %242 = vmatpush.xpose.msra.mxu1 %v233_v20  ;;  %v406_v53 = vld [vmem:[#allocation11 + $0x70] sm:$0xff]  ;;  %v309_v20 = vld [vmem:[#allocation9 + $0x48] sm:$0xff]  ;;  %v392_v48 = vld [vmem:[#allocation11] sm:$0xff] }
  0x2c   :  { %412 = vmatpush.xpose.msra.mxu3 %v407_v49 }
  0x2e   :  { %321 = vmatpush.xpose.msra.mxu2 %v314_v52 }
  0x2f   :  { %164 = vmatpush.xpose.msra.mxu0 %v151_v5  ;;  %243 = vmatpush.xpose.msra.mxu1 %v232_v21  ;;  %v401_v21 = vld [vmem:[#allocation11 + $0x48] sm:$0xff] }
  0x30   :  { %413 = vmatpush.xpose.msra.mxu3 %v406_v53 }
  0x32   :  { %322 = vmatpush.xpose.msra.mxu2 %v313_v12 }
  0x33   :  { %165 = vmatpush.xpose.msra.mxu0 %v150_v6  ;;  %244 = vmatpush.xpose.msra.mxu1 %v231_v22  ;;  %v765_v6 = vmov 1.0   ;;  %v308_v22 = vld [vmem:[#allocation9 + $0x40] sm:$0xff] }
  0x37   :  { %166 = vmatpush.xpose.msra.mxu0 %v149_v7  ;;  %245 = vmatpush.xpose.msra.mxu1 %v230_v23  ;;  %v400_v23 = vld [vmem:[#allocation11 + $0x40] sm:$0xff] }
  0x3b   :  { %167 = vmatpush.xpose.msra.mxu0 %v148_v8  ;;  %246 = vmatpush.xpose.msra.mxu1 %v229_v24  ;;  %v307_v24 = vld [vmem:[#allocation9 + $0x38] sm:$0xff] }
  0x3f   :  { %168 = vmatpush.xpose.msra.mxu0 %v147_v9  ;;  %247 = vmatpush.xpose.msra.mxu1 %v228_v25  ;;  %v399_v25 = vld [vmem:[#allocation11 + $0x38] sm:$0xff] }
  0x43   :  { %169 = vmatpush.xpose.msra.mxu0 %v146_v11  ;;  %248 = vmatpush.xpose.msra.mxu1 %v227_v26  ;;  %v306_v26 = vld [vmem:[#allocation9 + $0x30] sm:$0xff] }
  0x47   :  { %170 = vmatpush.xpose.msra.mxu0 %v145_v13  ;;  %249 = vmatpush.xpose.msra.mxu1 %v226_v27  ;;  %v405_v13 = vld [vmem:[#allocation11 + $0x68] sm:$0xff]  ;;  %v398_v27 = vld [vmem:[#allocation11 + $0x30] sm:$0xff] }
  0x48   :  { %414 = vmatpush.xpose.msra.mxu3 %v405_v13 }
  0x4b   :  { %171 = vmatpush.xpose.msra.mxu0 %v144_v14  ;;  %250 = vmatpush.xpose.msra.mxu1 %v225_v29  ;;  %v312_v14 = vld [vmem:[#allocation9 + $0x60] sm:$0xff]  ;;  %v305_v29 = vld [vmem:[#allocation9 + $0x28] sm:$0xff] }
  0x4c   :  { %323 = vmatpush.xpose.msra.mxu2 %v312_v14 }
  0x4f   :  { %172 = vmatpush.xpose.msra.mxu0 %v143_v15  ;;  %251 = vmatpush.xpose.msra.mxu1 %v224_v32  ;;  %v404_v15 = vld [vmem:[#allocation11 + $0x60] sm:$0xff] }
  0x50   :  { %415 = vmatpush.xpose.msra.mxu3 %v404_v15 }
  0x53   :  { %173 = vmatpush.xpose.msra.mxu0 %v142_v16  ;;  %252 = vmatpush.xpose.msra.mxu1 %v223_v35  ;;  %v311_v16 = vld [vmem:[#allocation9 + $0x58] sm:$0xff]  ;;  %v396_v35 = vld [vmem:[#allocation11 + $0x20] sm:$0xff] }
  0x54   :  { %324 = vmatpush.xpose.msra.mxu2 %v311_v16  ;;  %v485_v16 = vld [vmem:[#allocation12 + $0x68] sm:$0xff] }
  0x57   :  { %174 = vmatpush.xpose.msra.mxu0 %v141_v17  ;;  %253 = vmatpush.xpose.msra.mxu1 %v222_v38  ;;  %v403_v17 = vld [vmem:[#allocation11 + $0x58] sm:$0xff] }
  0x58   :  { %416 = vmatpush.xpose.msra.mxu3 %v403_v17  ;;  %v303_v38 = vld [vmem:[#allocation9 + $0x18] sm:$0xff]  ;;  %v484_v17 = vld [vmem:[#allocation12 + $0x60] sm:$0xff] }
  0x5b   :  { %175 = vmatpush.xpose.msra.mxu0 %v140_v18  ;;  %254 = vmatpush.xpose.msra.mxu1 %v221_v39  ;;  %v310_v18 = vld [vmem:[#allocation9 + $0x50] sm:$0xff]  ;;  %v395_v39 = vld [vmem:[#allocation11 + $0x18] sm:$0xff] }
  0x5c   :  { %325 = vmatpush.xpose.msra.mxu2 %v310_v18  ;;  %v483_v18 = vld [vmem:[#allocation12 + $0x58] sm:$0xff] }
  0x5e   :  { %176 = vmatmul.f32.vlgmr.msra.gmra.mxu0 %v139_v19  ;;  %v402_v19 = vld [vmem:[#allocation11 + $0x50] sm:$0xff] }
  0x5f   :  { %255 = vmatpush.xpose.msra.mxu1 %v220_v42  ;;  %417 = vmatpush.xpose.msra.mxu3 %v402_v19  ;;  %v394_v42 = vld [vmem:[#allocation11 + $0x10] sm:$0xff] }
  0x60   :  { %326 = vmatpush.xpose.msra.mxu2 %v309_v20  ;;  %v482_v19 = vld [vmem:[#allocation12 + $0x50] sm:$0xff]  ;;  %v481_v20 = vld [vmem:[#allocation12 + $0x48] sm:$0xff] }
  0x63   :  { %418 = vmatpush.xpose.msra.mxu3 %v401_v21  ;;  %v480_v21 = vld [vmem:[#allocation12 + $0x40] sm:$0xff] }
  0x64   :  { %327 = vmatpush.xpose.msra.mxu2 %v308_v22  ;;  %v479_v22 = vld [vmem:[#allocation12 + $0x38] sm:$0xff] }
  0x67   :  { %419 = vmatpush.xpose.msra.mxu3 %v400_v23  ;;  %v478_v23 = vld [vmem:[#allocation12 + $0x30] sm:$0xff] }
  0x68   :  { %328 = vmatpush.xpose.msra.mxu2 %v307_v24  ;;  %v558_v24 = vld [vmem:[%s925_s6] ss:$0 sm:$0xff] }
  0x6b   :  { %420 = vmatpush.xpose.msra.mxu3 %v399_v25  ;;  %v559_v25 = vld [vmem:[%s929_s10] ss:$0 sm:$0xff] }
  0x6c   :  { %329 = vmatpush.xpose.msra.mxu2 %v306_v26  ;;  %v477_v26 = vld [vmem:[#allocation12 + $0x28] sm:$0xff] }
  0x6f   :  { %421 = vmatpush.xpose.msra.mxu3 %v398_v27 }
  0x70   :  { %330 = vmatpush.xpose.msra.mxu2 %v305_v29 }
  0xdb   :  { %v177_v30 = vpop.f32.mrf.mxu0 }
  0xdc   :  { %v178_v31 = vadd.f32 %v556_v28, %v177_v30  ;;  %v557_v28 = vld [vmem:[%s923_s4] ss:$0 sm:$0xff]  ;;  %v397_v30 = vld [vmem:[#allocation11 + $0x28] sm:$0xff] }
  0xdd   :  { %422 = vmatpush.xpose.msra.mxu3 %v397_v30 }
  0xde   :  { %v181_v33 = vmul.f32 0.70710677, %v178_v31  ;;  %v180_v9 = vmul.f32 0.5, %v178_v31 }
  0xe0   :  { %v184_v34 = vand.u32 2147483647, %v181_v33  ;;  %vm182_vm4 = vcmp.lt.f32.partialorder %v181_v33, 0.0 }
  0xe1   :  { %v183_v7 = vsel %vm182_vm4, -1.0, %v765_v6  ;;  %423 = vmatpush.xpose.msra.mxu3 %v396_v35 }
  0xe2   :  { %v185_v36 = vmul.f32 0.3275911, %v184_v34  ;;  %v211_v54 = vsub.f32 0.0, %v184_v34 }
  0xe4   :  { %v186_v37 = vadd.f32 1.0, %v185_v36  ;;  %v212_v58 = vmul.f32 %v211_v54, %v184_v34  ;;  %v304_v34 = vld [vmem:[#allocation9 + $0x20] sm:$0xff]  ;;  %v487_v54 = vld [vmem:[#allocation12 + $0x78] sm:$0xff] }
  0xe5   :  { %331 = vmatpush.xpose.msra.mxu2 %v304_v34  ;;  %424 = vmatpush.xpose.msra.mxu3 %v395_v39 }
  0xe6   :  { %563 = vrcp.f32 %v186_v37  ;;  %v198_v44 = vand.u32 2147483648, %v186_v37  ;;  %v196_v46 = vand.u32 2147483647, %v186_v37  ;;  %vm192_vm1 = vweird.f32 %v186_v37  ;;  %492 = vmatpush.xpose.msrb.mxu0 %v487_v54 }
  0xe7   :  { %v213_v61 = vmul.f32 1.442695, %v212_v58 }
  0xe8   :  { %v199_v50 = vor.u32 1.1754944e-38, %v198_v44  ;;  %vm197_vm3 = vcmp.eq.f32.partialorder %v196_v46, 8.507059e+37  ;;  %v393_v44 = vld [vmem:[#allocation11 + $0x8] sm:$0xff] }
  0xe9   :  { %565 = vpow2.f32 %v213_v61  ;;  %332 = vmatpush.xpose.msra.mxu2 %v303_v38  ;;  %425 = vmatpush.xpose.msra.mxu3 %v394_v42  ;;  %v475_v38 = vld [vmem:[#allocation12 + $0x18] sm:$0xff]  ;;  %v473_v42 = vld [vmem:[#allocation12 + $0x8] sm:$0xff] }
  0xec   :  { %v564_v40 = vpop.eup %563 }
  0xed   :  { %v188_v41 = vmul.f32 %v564_v40, %v186_v37  ;;  %vm193_vm0 = vweird.f32 %v564_v40  ;;  %426 = vmatpush.xpose.msra.mxu3 %v393_v44 }
  0xee   :  { %vm194_vm2 = vmor %vm192_vm1, %vm193_vm0 }
  0xef   :  { %v189_v43 = vsub.f32 1.0, %v188_v41  ;;  %v566_v3 = vpop.eup %565  ;;  %v302_v41 = vld [vmem:[#allocation9 + $0x10] sm:$0xff] }
  0xf0   :  { %333 = vmatpush.xpose.msra.mxu2 %v302_v41  ;;  %v474_v41 = vld [vmem:[#allocation12 + $0x10] sm:$0xff] }
  0xf1   :  { %v190_v45 = vmul.f32 %v564_v40, %v189_v43  ;;  %v301_v43 = vld [vmem:[#allocation9 + $0x8] sm:$0xff]  ;;  %427 = vmatpush.xpose.msra.mxu3 %v392_v48 }
  0xf3   :  { %v191_v47 = vadd.f32 %v564_v40, %v190_v45 }
  0xf4   :  { %334 = vmatpush.xpose.msra.mxu2 %v301_v43 }
  0xf5   :  { %v195_v51 = vsel %vm194_vm2, %v564_v40, %v191_v47  ;;  %v300_v47 = vld [vmem:[#allocation9] sm:$0xff] }
  0xf6   :  { %v200_v55 = vsel %vm197_vm3, %v199_v50, %v195_v51 }
  0xf7   :  { %v202_v56 = vmul.f32 1.0614054, %v200_v55 }
  0xf8   :  { %335 = vmatpush.xpose.msra.mxu2 %v300_v47  ;;  %v472_v47 = vld [vmem:[#allocation12] sm:$0xff] }
  0xf9   :  { %v203_v57 = vadd.f32 -1.4531521, %v202_v56 }
  0xfb   :  { %v204_v59 = vmul.f32 %v203_v57, %v200_v55  ;;  %v486_v57 = vld [vmem:[#allocation12 + $0x70] sm:$0xff] }
  0xfc   :  { %493 = vmatpush.xpose.msrb.mxu0 %v486_v57 }
  0xfd   :  { %v205_v60 = vadd.f32 1.4214138, %v204_v59 }
  0xff   :  { %v206_v62 = vmul.f32 %v205_v60, %v200_v55 }
 0x100   :  { %494 = vmatpush.xpose.msrb.mxu0 %v485_v16 }
 0x101   :  { %v207_v63 = vadd.f32 -0.28449672, %v206_v62 }
 0x103   :  { %v208_v0 = vmul.f32 %v207_v63, %v200_v55 }
 0x104   :  { %495 = vmatpush.xpose.msrb.mxu0 %v484_v17 }
 0x105   :  { %v209_v1 = vadd.f32 0.2548296, %v208_v0 }
 0x107   :  { %v210_v2 = vmul.f32 %v209_v1, %v200_v55 }
 0x108   :  { %496 = vmatpush.xpose.msrb.mxu0 %v483_v18 }
 0x109   :  { %v215_v4 = vmul.f32 %v566_v3, %v210_v2 }
 0x10b   :  { %v216_v5 = vsub.f32 1.0, %v215_v4 }
 0x10c   :  { %497 = vmatpush.xpose.msrb.mxu0 %v482_v19 }
 0x10d   :  { %v217_v8 = vmul.f32 %v216_v5, %v183_v7 }
 0x10f   :  { %v218_v10 = vadd.f32 1.0, %v217_v8 }
 0x110   :  { %498 = vmatpush.xpose.msrb.mxu0 %v481_v20 }
 0x111   :  { %v219_v11 = vmul.f32 %v218_v10, %v180_v9 }
 0x113   :  { %256 = vmatmul.f32.vlgmr.msra.gmra.mxu1 %v219_v11 }
 0x114   :  { %499 = vmatpush.xpose.msrb.mxu0 %v480_v21 }
 0x118   :  { %500 = vmatpush.xpose.msrb.mxu0 %v479_v22 }
 0x11c   :  { %501 = vmatpush.xpose.msrb.mxu0 %v478_v23 }
 0x120   :  { %502 = vmatpush.xpose.msrb.mxu0 %v477_v26 }
 0x190   :  { %v257_v31 = vpop.f32.mrf.mxu1 }
 0x191   :  { %v881_v32 = vadd.f32 %v557_v28, %v257_v31 }
 0x193   :  { %v261_v33 = vmul.f32 0.70710677, %v881_v32  ;;  %v260_v13 = vmul.f32 0.5, %v881_v32 }
 0x195   :  { %v264_v36 = vand.u32 2147483647, %v261_v33  ;;  %vm262_vm9 = vcmp.lt.f32.partialorder %v261_v33, 0.0  ;;  %v476_v33 = vld [vmem:[#allocation12 + $0x20] sm:$0xff] }
 0x196   :  { %v263_v11 = vsel %vm262_vm9, -1.0, %v765_v6  ;;  %503 = vmatpush.xpose.msrb.mxu0 %v476_v33 }
 0x197   :  { %v265_v37 = vmul.f32 0.3275911, %v264_v36  ;;  %v291_v58 = vsub.f32 0.0, %v264_v36 }
 0x199   :  { %v266_v40 = vadd.f32 1.0, %v265_v37  ;;  %v292_v62 = vmul.f32 %v291_v58, %v264_v36 }
 0x19a   :  { %504 = vmatpush.xpose.msrb.mxu0 %v475_v38 }
 0x19b   :  { %567 = vrcp.f32 %v266_v40  ;;  %v278_v50 = vand.u32 2147483648, %v266_v40  ;;  %v276_v52 = vand.u32 2147483647, %v266_v40  ;;  %vm272_vm6 = vweird.f32 %v266_v40 }
 0x19c   :  { %v293_v1 = vmul.f32 1.442695, %v292_v62 }
 0x19d   :  { %v279_v55 = vor.u32 1.1754944e-38, %v278_v50  ;;  %vm277_vm8 = vcmp.eq.f32.partialorder %v276_v52, 8.507059e+37 }
 0x19e   :  { %569 = vpow2.f32 %v293_v1  ;;  %505 = vmatpush.xpose.msrb.mxu0 %v474_v41  ;;  %v560_v41 = vld [vmem:[%s926_s7] ss:$0 sm:$0xff]  ;;  %s767_s7 = smov [#allocation14]  }
 0x19f   :  { %s528_s23 = sshll.u32 %s767_s7, 4  ;;  %s529_s23 = int_to_ptr.vmem [resolvable:$true] %s528_s23 }
 0x1a1   :  { %v568_v45 = vpop.eup %567 }
 0x1a2   :  { %v268_v46 = vmul.f32 %v568_v45, %v266_v40  ;;  %vm273_vm5 = vweird.f32 %v568_v45  ;;  %506 = vmatpush.xpose.msrb.mxu0 %v473_v42 }
 0x1a3   :  { %vm274_vm7 = vmor %vm272_vm6, %vm273_vm5 }
 0x1a4   :  { %v269_v49 = vsub.f32 1.0, %v268_v46  ;;  %v570_v8 = vpop.eup %569 }
 0x1a6   :  { %v270_v51 = vmul.f32 %v568_v45, %v269_v49  ;;  %507 = vmatpush.xpose.msrb.mxu0 %v472_v47 }
 0x1a8   :  { %v271_v53 = vadd.f32 %v568_v45, %v270_v51 }
 0x1aa   :  { %v275_v56 = vsel %vm274_vm7, %v568_v45, %v271_v53 }
 0x1ab   :  { %v280_v59 = vsel %vm277_vm8, %v279_v55, %v275_v56 }
 0x1ac   :  { %v282_v60 = vmul.f32 1.0614054, %v280_v59 }
 0x1ae   :  { %v283_v61 = vadd.f32 -1.4531521, %v282_v60 }
 0x1b0   :  { %v284_v63 = vmul.f32 %v283_v61, %v280_v59 }
 0x1b2   :  { %v285_v0 = vadd.f32 1.4214138, %v284_v63 }
 0x1b4   :  { %v286_v2 = vmul.f32 %v285_v0, %v280_v59 }
 0x1b6   :  { %v287_v3 = vadd.f32 -0.28449672, %v286_v2 }
 0x1b8   :  { %v288_v4 = vmul.f32 %v287_v3, %v280_v59 }
 0x1ba   :  { %v289_v5 = vadd.f32 0.2548296, %v288_v4 }
 0x1bc   :  { %v290_v7 = vmul.f32 %v289_v5, %v280_v59 }
 0x1be   :  { %v295_v9 = vmul.f32 %v570_v8, %v290_v7 }
 0x1c0   :  { %v296_v10 = vsub.f32 1.0, %v295_v9 }
 0x1c2   :  { %v297_v12 = vmul.f32 %v296_v10, %v263_v11 }
 0x1c4   :  { %v298_v14 = vadd.f32 1.0, %v297_v12 }
 0x1c6   :  { %v299_v15 = vmul.f32 %v298_v14, %v260_v13 }
 0x1c8   :  { %336 = vmatmul.f32.vlgmr.msra.gmra.mxu2 %v299_v15  ;;  %428 = vmatmul.f32.vlgmr.msra.gmra.mxu3 %v299_v15 }
 0x24b   :  { %v337_v27 = vpop.f32.mrf.mxu2  ;;  %v429_v28 = vpop.f32.mrf.mxu3 }
 0x24c   :  { %v892_v29 = vadd.f32 %v558_v24, %v337_v27  ;;  %v894_v30 = vadd.f32 %v559_v25, %v429_v28 }
 0x24e   :  { %v897_v31 = vmul.f32 0.70710677, %v892_v29  ;;  %v900_v32 = vmul.f32 0.70710677, %v894_v30 }
 0x250   :  { %v344_v34 = vand.u32 2147483647, %v897_v31  ;;  %v436_v35 = vand.u32 2147483647, %v900_v32  ;;  %vm342_vm2 = vcmp.lt.f32.partialorder %v897_v31, 0.0  ;;  %vm434_vm3 = vcmp.lt.f32.partialorder %v900_v32, 0.0 }
 0x251   :  { %v432_v31 = vmul.f32 0.5, %v894_v30 }
 0x252   :  { %v345_v36 = vmul.f32 0.3275911, %v344_v34  ;;  %v437_v37 = vmul.f32 0.3275911, %v436_v35  ;;  %v371_v61 = vsub.f32 0.0, %v344_v34  ;;  %v463_v0 = vsub.f32 0.0, %v436_v35 }
 0x254   :  { %v346_v39 = vadd.f32 1.0, %v345_v36  ;;  %v438_v40 = vadd.f32 1.0, %v437_v37  ;;  %v372_v5 = vmul.f32 %v371_v61, %v344_v34  ;;  %v464_v8 = vmul.f32 %v463_v0, %v436_v35 }
 0x255   :  { %v343_v35 = vsel %vm342_vm2, -1.0, %v765_v6  ;;  %v435_v36 = vsel %vm434_vm3, -1.0, %v765_v6  ;;  %v561_v6 = vld [vmem:[#allocation2] ss:$0 sm:$0xff] }
 0x256   :  { %571 = vrcp.f32 %v346_v39  ;;  %v358_v50 = vand.u32 2147483648, %v346_v39  ;;  %v450_v51 = vand.u32 2147483648, %v438_v40  ;;  %v356_v53 = vand.u32 2147483647, %v346_v39 }
 0x257   :  { %573 = vrcp.f32 %v438_v40  ;;  %v448_v55 = vand.u32 2147483647, %v438_v40  ;;  %vm352_vm12 = vweird.f32 %v346_v39  ;;  %vm444_vm13 = vweird.f32 %v438_v40 }
 0x258   :  { %v359_v58 = vor.u32 1.1754944e-38, %v358_v50  ;;  %v451_v59 = vor.u32 1.1754944e-38, %v450_v51  ;;  %vm357_vm0 = vcmp.eq.f32.partialorder %v356_v53, 8.507059e+37  ;;  %v373_v12 = vmul.f32 1.442695, %v372_v5 }
 0x259   :  { %vm449_vm1 = vcmp.eq.f32.partialorder %v448_v55, 8.507059e+37  ;;  %v465_v14 = vmul.f32 1.442695, %v464_v8 }
 0x25a   :  { %575 = vpow2.f32 %v373_v12 }
 0x25b   :  { %577 = vpow2.f32 %v465_v14 }
 0x25c   :  { %v572_v43 = vpop.eup %571 }
 0x25d   :  { %v574_v44 = vpop.eup %573  ;;  %v348_v45 = vmul.f32 %v572_v43, %v346_v39  ;;  %vm353_vm10 = vweird.f32 %v572_v43  ;;  %v340_v39 = vmul.f32 0.5, %v892_v29  ;;  %v562_v29 = vld [vmem:[%s931_s12] ss:$0 sm:$0xff] }
 0x25e   :  { %v440_v46 = vmul.f32 %v574_v44, %v438_v40  ;;  %vm445_vm11 = vweird.f32 %v574_v44  ;;  %vm354_vm14 = vmor %vm352_vm12, %vm353_vm10 }
 0x25f   :  { %v349_v48 = vsub.f32 1.0, %v348_v45  ;;  %vm446_vm15 = vmor %vm444_vm13, %vm445_vm11  ;;  %v766_v45 = vmov 0  }
 0x260   :  { %v441_v49 = vsub.f32 1.0, %v440_v46  ;;  %v576_v24 = vpop.eup %575  ;;  %554 = vset.pattern.permute.xlu1 %v766_v45  ;;  %555 = vset.pattern.permute.xlu0 %v766_v45 }
 0x261   :  { %v350_v52 = vmul.f32 %v572_v43, %v349_v48  ;;  %v578_v26 = vpop.eup %577 }
 0x262   :  { %v442_v54 = vmul.f32 %v574_v44, %v441_v49 }
 0x263   :  { %v351_v56 = vadd.f32 %v572_v43, %v350_v52 }
 0x264   :  { %v443_v57 = vadd.f32 %v574_v44, %v442_v54 }
 0x265   :  { %v355_v60 = vsel %vm354_vm14, %v572_v43, %v351_v56 }
 0x266   :  { %v447_v62 = vsel %vm446_vm15, %v574_v44, %v443_v57  ;;  %v360_v63 = vsel %vm357_vm0, %v359_v58, %v355_v60 }
 0x267   :  { %v452_v1 = vsel %vm449_vm1, %v451_v59, %v447_v62  ;;  %v362_v2 = vmul.f32 1.0614054, %v360_v63 }
 0x268   :  { %v454_v3 = vmul.f32 1.0614054, %v452_v1 }
 0x269   :  { %v363_v4 = vadd.f32 -1.4531521, %v362_v2 }
 0x26a   :  { %v455_v7 = vadd.f32 -1.4531521, %v454_v3 }
 0x26b   :  { %v364_v9 = vmul.f32 %v363_v4, %v360_v63 }
 0x26c   :  { %v456_v10 = vmul.f32 %v455_v7, %v452_v1 }
 0x26d   :  { %v365_v11 = vadd.f32 1.4214138, %v364_v9 }
 0x26e   :  { %v457_v13 = vadd.f32 1.4214138, %v456_v10 }
 0x26f   :  { %v366_v15 = vmul.f32 %v365_v11, %v360_v63 }
 0x270   :  { %v458_v16 = vmul.f32 %v457_v13, %v452_v1 }
 0x271   :  { %v367_v17 = vadd.f32 -0.28449672, %v366_v15 }
 0x272   :  { %v459_v18 = vadd.f32 -0.28449672, %v458_v16 }
 0x273   :  { %v368_v19 = vmul.f32 %v367_v17, %v360_v63 }
 0x274   :  { %v460_v20 = vmul.f32 %v459_v18, %v452_v1 }
 0x275   :  { %v369_v21 = vadd.f32 0.2548296, %v368_v19 }
 0x276   :  { %v461_v22 = vadd.f32 0.2548296, %v460_v20 }
 0x277   :  { %v370_v23 = vmul.f32 %v369_v21, %v360_v63 }
 0x278   :  { %v462_v25 = vmul.f32 %v461_v22, %v452_v1 }
 0x279   :  { %v375_v27 = vmul.f32 %v576_v24, %v370_v23 }
 0x27a   :  { %v467_v28 = vmul.f32 %v578_v26, %v462_v25 }
 0x27b   :  { %v376_v33 = vsub.f32 1.0, %v375_v27 }
 0x27c   :  { %v468_v34 = vsub.f32 1.0, %v467_v28 }
 0x27d   :  { %v377_v37 = vmul.f32 %v376_v33, %v343_v35 }
 0x27e   :  { %v469_v38 = vmul.f32 %v468_v34, %v435_v36 }
 0x27f   :  { %v378_v40 = vadd.f32 1.0, %v377_v37 }
 0x280   :  { %v470_v42 = vadd.f32 1.0, %v469_v38 }
 0x281   :  { %v379_v32 = vmul.f32 %v378_v40, %v340_v39 }
 0x282   :  { %v471_v43 = vmul.f32 %v470_v42, %v432_v31 }
 0x283   :  { %v384_v44 = vmul.f32 %v560_v41, %v379_v32 }
 0x284   :  { %508 = vmatmul.f32.vlgmr.msrb.gmra.mxu0 %v471_v43 }
 0x285   :  { %385 = vadd.xlane.f32.xlu0 %v384_v44 }
 0x2f8   :  { %v386_v46 = vpop.xlane.xlu0 %385 }
 0x2f9   :  { %v391_v47 = vadd.f32 %v561_v6, %v386_v46 }
 0x2fb   :  { %518 = vperm.xlu1 %554, %v391_v47  }
 0x301   :  { %v509_v48 = vpop.f32.mrf.mxu0 }
 0x302   :  { %v510_v49 = vadd.f32 %v562_v29, %v509_v48 }
 0x304   :  { %512 = vadd.xlane.f32.xlu0 %v510_v49 }
 0x36d   :  { %v519_v52 = vpop.permute.xlu1 %518 }
 0x377   :  { %v513_v30 = vpop.xlane.xlu0 %512 }
 0x378   :  { %v514_v50 = vmul.f32 0.16666667, %v513_v30 }
 0x37a   :  { %v515_v51 = vsub.f32 %v510_v49, %v514_v50 }
 0x37c   :  { %v521_v53 = vadd.f32 %v519_v52, %v515_v51 }
 0x37e   :  { %522 = vst [vmem:[#allocation14] sm:$0xff] %v521_v53 }
 0x37f   :  { %533 = dma.vmem_to_hbm [thread:$0]  %s529_s23, 128, %s531_s26, [#allocation5]  }
 0x380   :  { %755 = dma.done.wait [#allocation5], 128  }
 0x381   :  { %756 = vsyncadd [#allocation5], 4294967168 }
 0x382   :  { %538 = vsyncpa [#allocation4], 1 }
 0x383   :  { %539 = vsyncpa [#allocation7], 1 }
 0x384   :  { %540 = vsyncpa [#allocation10], 1 }
 0x385   :  { %541 = vsyncpa [#allocation13], 1 }
 0x386   :  { %542 = vsyncpa [#allocation5], 1 }

</bundles_post_ra>
